<compile_context>
chip_gen: v7x
topology: tpu7x:2x2x1
jax: 0.10.0
libtpu: 0.0.40
codegen_flags: <defaults>
</compile_context>

<pallas_src>
import functools

import numpy as np
import jax
import jax.numpy as jnp
from jax import lax
from jax.experimental import pallas as pl
from jax.experimental.pallas import tpu as pltpu


def _aa_down_kernel(x_ref, s_ref, o_ref, *, ho):
    """One block of whole (batch*channel) planes.

    x_ref : (Rblk, 2W) bf16 — row r = [x[2*oh, :] | x[2*oh+1, :]] of its plane
    s_ref : (W, Wo)    f32  — constant horizontal [1,2,1]/16 + stride-2 + reflect
    o_ref : (Rblk, Wo) bf16 — output rows
    """
    rblk, w2 = x_ref.shape
    w = w2 // 2

    xe = x_ref[:, 0:w].astype(jnp.float32)    # even input rows  x[2*oh,   :]
    xo = x_ref[:, w:w2].astype(jnp.float32)   # odd  input rows  x[2*oh+1, :]

    # "Previous odd row" via a sublane rotate (XLU; no scratch, no stores).
    # prev[r] = xo[r-1], with a circular wrap at r == 0.
    prev = pltpu.roll(xo, shift=1, axis=0)

    # Reflect padding on rows: xp[-1] == xp[1]  =>  at every plane top the
    # "previous odd row" is the plane's own first odd row.  Blocks always start
    # on a plane boundary (rblk = nblk * ho), so this also discards the wrapped
    # value at r == 0.  Narrow (Rblk, 1) mask, broadcast by jnp.where.
    ridx = lax.broadcasted_iota(jnp.int32, (rblk, 1), 0)
    prev = jnp.where(ridx % ho == 0, xo, prev)

    # Vertical [1, 2, 1], stride 2, kept in f32 (exact for bf16 inputs).
    t = prev + 2.0 * xe + xo

    # Horizontal [1, 2, 1]/16, stride 2, reflect — one small MXU matmul against
    # a constant matrix.  f32 matmul: MXU is idle, and this avoids the extra
    # bf16 rounding of the intermediate flagged in review.
    o_ref[...] = jnp.dot(t, s_ref[...],
                         preferred_element_type=jnp.float32).astype(o_ref.dtype)


def _stride2_filter_matrix(w):
    """Constant (W, W/2) matrix: columns = stride-2 3-tap [1,2,1]/16 with reflect."""
    wo = w // 2
    s = np.zeros((w, wo), np.float32)
    for ow in range(wo):
        left = 2 * ow - 1
        if left < 0:
            left = 1                      # reflect: padded col -1 -> input col 1
        s[left, ow] += 1.0
        s[2 * ow, ow] += 2.0
        s[2 * ow + 1, ow] += 1.0
    s /= 16.0
    return jnp.asarray(s, dtype=jnp.float32)


def _vmem_budget_bytes():
    """Per-step input-block byte budget, sized to the chip generation."""
    try:
        info = pltpu.get_tpu_info()
        vmem = getattr(info, "vmem_capacity_bytes", None) or (128 << 20)
    except Exception:  # CPU interpret / lookup failure: assume big-VMEM part
        vmem = 128 << 20
    # ~4 MiB blocks on 64-MiB-VMEM parts (v7x), ~6 MiB on 128-MiB parts
    # (v5e/v6e): big enough to amortize the ~0.35 us/step grid overhead while
    # leaving room for in/out double buffers + f32 intermediates.
    return (4 << 20) if vmem <= (64 << 20) else (6 << 20)


def _pick_planes_per_block(n_planes, ho, plane_bytes, budget, min_steps=4):
    """Pick planes-per-block: a divisor of n_planes whose row count is sublane
    legal ((d*ho) % 8 == 0, or the whole array).  Preference order: fits the
    VMEM byte budget > leaves >=2 grid steps (megacore) > 16-row alignment
    (bf16 packs 16 rows/vreg) > leaves >=min_steps steps (>=2 per core on a
    2-core part) > fattest block."""
    legal = [d for d in range(1, n_planes + 1)
             if n_planes % d == 0 and ((d * ho) % 8 == 0 or d == n_planes)]

    def score(d):
        steps = n_planes // d
        return (d * plane_bytes <= budget,
                steps >= 2,
                (d * ho) % 16 == 0,
                steps >= min_steps,
                d)

    return max(legal, key=score)


def downsample2d(x, *, budget_bytes=None):
    """Anti-aliasing downsample: reflect-pad(1) + depthwise [1,2,1]x[1,2,1]/16,
    stride 2.  x: (B, C, H, W) -> (B, C, H//2, W//2), same dtype as x."""
    B, C, H, W = x.shape
    assert H % 2 == 0 and W % 2 == 0, "even spatial dims expected"
    orig_dtype = x.dtype

    N, Ho, Wo = B * C, H // 2, W // 2
    rows = N * Ho
    if budget_bytes is None:
        budget_bytes = _vmem_budget_bytes()

    # bf16 HBM residency (matches the module's half-precision filter path);
    # the reshape is metadata-only (row-major), so each kernel row is one
    # even/odd input-row pair and the stride-2 row split costs zero HBM traffic.
    xr = x.astype(jnp.bfloat16).reshape(rows, 2 * W)
    s = _stride2_filter_matrix(W)

    nblk = _pick_planes_per_block(N, Ho, H * W * 2, budget_bytes)
    rblk = nblk * Ho
    grid = (N // nblk,)

    # VMEM limit from the *actual* chosen block: double-buffered bf16 in/out,
    # ~4 block-sized f32 intermediates (xe/xo/prev/t & matmul result), margin.
    in_blk = rblk * 2 * W * 2
    out_blk = rblk * Wo * 2
    vmem_limit = int(2 * in_blk + 2 * out_blk + 4 * (rblk * W * 4) + (4 << 20))

    cost = pl.CostEstimate(
        flops=rows * W * 4 + 2 * rows * W * Wo,
        transcendentals=0,
        bytes_accessed=rows * 2 * W * 2 + rows * Wo * 2 + W * Wo * 4)

    kernel = functools.partial(_aa_down_kernel, ho=Ho)
    out2d = pl.pallas_call(
        kernel,
        out_shape=jax.ShapeDtypeStruct((rows, Wo), jnp.bfloat16),
        grid=grid,
        in_specs=[
            pl.BlockSpec((rblk, 2 * W), lambda i: (i, 0)),   # streamed planes
            pl.BlockSpec((W, Wo), lambda i: (0, 0)),         # constant, resident
        ],
        out_specs=pl.BlockSpec((rblk, Wo), lambda i: (i, 0)),
        compiler_params=pltpu.CompilerParams(
            dimension_semantics=("parallel",),
            vmem_limit_bytes=vmem_limit),
        cost_estimate=cost,
    )(xr, s)

    out = out2d.reshape(B, C, Ho, Wo)                        # free reshape
    return out if out.dtype == orig_dtype else out.astype(orig_dtype)


def downsample2d_ref(x):
    """Pure-JAX reference: reflect pad + depthwise stride-2 conv, f32."""
    C = x.shape[1]
    a = jnp.array([1.0, 2.0, 1.0], jnp.float32)
    f = a[:, None] * a[None, :]
    f = f / f.sum()
    filt = jnp.tile(f[None, None, :, :], (C, 1, 1, 1))
    xp = jnp.pad(x.astype(jnp.float32), ((0, 0), (0, 0), (1, 1), (1, 1)),
                 mode="reflect")
    return lax.conv_general_dilated(
        xp, filt, window_strides=(2, 2), padding="VALID",
        dimension_numbers=("NCHW", "OIHW", "NCHW"),
        feature_group_count=C)


if __name__ == "__main__":
    B, C, H, W = 2, 4, 16, 16
    key = jax.random.PRNGKey(0)
    x = jax.random.normal(key, (B, C, H, W), dtype=jnp.float32).astype(jnp.bfloat16)

    out = downsample2d(x)
    out = jax.block_until_ready(out)

    ref = downsample2d_ref(x)
    assert out.shape == (B, C, H // 2, W // 2), out.shape
    assert out.dtype == x.dtype, out.dtype
    assert jnp.allclose(out.astype(jnp.float32), ref, atol=2e-2, rtol=2e-2), \
        "mismatch vs reference conv"

    print("KERNEL_OK")
</pallas_src>

<mosaic_0001>
module attributes {stable_mosaic.version = 11 : i64} {
  func.func @_aa_down_kernel(%arg0: i32, %arg1: memref<16x32xbf16, #tpu.memory_space<vmem>>, %arg2: memref<16x8xf32, #tpu.memory_space<vmem>>, %arg3: memref<16x8xbf16, #tpu.memory_space<vmem>>) attributes {dimension_semantics = [#tpu.dimension_semantics<parallel>], iteration_bounds = array<i64: 4>, scalar_prefetch = 0 : i64, scratch_operands = 0 : i64, tpu.core_type = #tpu.core_type<tc>, window_params = [{transform_indices = @transform_0, window_bounds = array<i64: 16, 32>}, {pipeline_mode = #tpu.pipeline_mode<synchronous>, transform_indices = @transform_1, window_bounds = array<i64: 16, 8>}, {transform_indices = @transform_2, window_bounds = array<i64: 16, 8>}]} {
    %c0 = arith.constant 0 : index
    %c0_0 = arith.constant 0 : index
    %0 = vector.load %arg1[%c0, %c0_0] : memref<16x32xbf16, #tpu.memory_space<vmem>>, vector<16x16xbf16>
    %1 = arith.extf %0 : vector<16x16xbf16> to vector<16x16xf32>
    %c0_1 = arith.constant 0 : index
    %c16 = arith.constant 16 : index
    %2 = vector.load %arg1[%c0_1, %c16] : memref<16x32xbf16, #tpu.memory_space<vmem>>, vector<16x16xbf16>
    %3 = arith.extf %2 : vector<16x16xbf16> to vector<16x16xf32>
    %c1_i32 = arith.constant 1 : i32
    %4 = tpu.dynamic_rotate %3 by %c1_i32 dim 0 : vector<16x16xf32>, i32 -> vector<16x16xf32>
    %5 = tpu.iota {dimensions = array<i32: 0>} : vector<16x1xi32>
    %c8_i32 = arith.constant 8 : i32
    %c0_i32 = arith.constant 0 : i32
    %6 = arith.cmpi eq, %c8_i32, %c0_i32 : i32
    %c1_i32_2 = arith.constant 1 : i32
    %7 = arith.select %6, %c1_i32_2, %c8_i32 : i32
    %8 = vector.broadcast %7 : i32 to vector<16x1xi32>
    %9 = arith.remsi %5, %8 : vector<16x1xi32>
    %c0_i32_3 = arith.constant 0 : i32
    %10 = vector.broadcast %c0_i32_3 : i32 to vector<16x1xi32>
    %11 = arith.cmpi ne, %9, %10 : vector<16x1xi32>
    %c0_i32_4 = arith.constant 0 : i32
    %12 = vector.broadcast %c0_i32_4 : i32 to vector<16x1xi32>
    %13 = arith.cmpi slt, %9, %12 : vector<16x1xi32>
    %c0_i32_5 = arith.constant 0 : i32
    %14 = arith.cmpi slt, %7, %c0_i32_5 : i32
    %15 = vector.broadcast %14 : i1 to vector<16x1xi1>
    %16 = vector.broadcast %15 : vector<16x1xi1> to vector<16x1xi1>
    %17 = arith.xori %13, %16 : vector<16x1xi1>
    %18 = arith.andi %17, %11 : vector<16x1xi1>
    %19 = vector.broadcast %7 : i32 to vector<16x1xi32>
    %20 = arith.addi %9, %19 : vector<16x1xi32>
    %21 = arith.select %18, %20, %9 : vector<16x1xi1>, vector<16x1xi32>
    %c0_i32_6 = arith.constant 0 : i32
    %22 = vector.broadcast %c0_i32_6 : i32 to vector<16x1xi32>
    %23 = arith.cmpi eq, %21, %22 : vector<16x1xi32>
    %24 = vector.shape_cast %23 : vector<16x1xi1> to vector<16x1xi1>
    %25 = vector.broadcast %24 : vector<16x1xi1> to vector<16x16xi1>
    %26 = arith.select %25, %3, %4 : vector<16x16xi1>, vector<16x16xf32>
    %cst = arith.constant 2.000000e+00 : f32
    %27 = vector.broadcast %cst : f32 to vector<16x16xf32>
    %28 = arith.mulf %27, %1 : vector<16x16xf32>
    %29 = arith.addf %26, %28 : vector<16x16xf32>
    %30 = arith.addf %29, %3 : vector<16x16xf32>
    %c0_7 = arith.constant 0 : index
    %c0_8 = arith.constant 0 : index
    %31 = vector.load %arg2[%c0_7, %c0_8] : memref<16x8xf32, #tpu.memory_space<vmem>>, vector<16x8xf32>
    %cst_9 = arith.constant dense<0.000000e+00> : vector<16x8xf32>
    %32 = tpu.matmul %30, %31, %cst_9 {dimension_numbers = #tpu.dot_dimension_numbers<[1], [0], [0], [1], [0, 0, 1, 1], [], []>} : vector<16x16xf32>, vector<16x8xf32>, vector<16x8xf32> -> vector<16x8xf32>
    %33 = arith.truncf %32 : vector<16x8xf32> to vector<16x8xbf16>
    %c0_10 = arith.constant 0 : index
    %c0_11 = arith.constant 0 : index
    %34 = vector.load %arg3[%c0_10, %c0_11] : memref<16x8xbf16, #tpu.memory_space<vmem>>, vector<16x8xbf16>
    tpu.vector_store %arg3[%c0_10, %c0_11], %33 {strides = array<i32>} : memref<16x8xbf16, #tpu.memory_space<vmem>>, vector<16x8xbf16>,
    return
  }
  func.func @transform_0(%arg0: i32) -> (i32, i32) {
    %c0_i32 = arith.constant 0 : i32
    %c0_i32_0 = arith.constant 0 : i32
    return %arg0, %c0_i32 : i32, i32
  }
  func.func @transform_1(%arg0: i32) -> (i32, i32) {
    %c0_i32 = arith.constant 0 : i32
    %c0_i32_0 = arith.constant 0 : i32
    %c0_i32_1 = arith.constant 0 : i32
    return %c0_i32, %c0_i32_0 : i32, i32
  }
  func.func @transform_2(%arg0: i32) -> (i32, i32) {
    %c0_i32 = arith.constant 0 : i32
    %c0_i32_0 = arith.constant 0 : i32
    return %arg0, %c0_i32 : i32, i32
  }
}

</mosaic_0001>

<bundles_post_ra>
// kernel: tpu_custom_call.1
= control target key start
LH: loop header
LB: loop body
LE: loop exit
PB: predicated region body
PF: predicated region fallthrough
CT: control target
= control target key end

     0   :  { %s457_s9 = smov 0   ;;  %s490_s0 = inlined_call_operand.vmem [shape: bf16[64,32], index: 0, kind: input, shape index: {}]   ;;  %s491_s1 = inlined_call_operand.vmem [shape: f32[16,8], index: 1, kind: input, shape index: {}]   ;;  %s492_s2 = inlined_call_operand.vmem [shape: bf16[64,8], index: 2, kind: output, shape index: {}]  }
   0x1 LB: > { %s376_s10 = sadd.s32 4294967295, %s438_s9   ;;  %p380_p0 = scmp.ge.s32.totalorder %s438_s9, 1  ;;  %s438_s9 = sphi %s457_s9, %s12_s9  }
   0x2   : > { %p113_p1 = scmp.lt.s32.totalorder %s438_s9, 5 }
   0x4   : > { %p114_p2 = pnand %p380_p0, %p113_p1 }
   0x5   : > { %s381_s11 = sshll.u32 (!%p114_p2), %s376_s10, 1  ;;  %s440_s16 = smov (!%p114_p2), 112   ;;  %v161_v6 = vlaneseq (!%p114_p2)  ;;  %v221_v11 = vld [vmem:[%s491_s1] sm:$0xff] (!%p114_p2)  ;;  %v222_v12 = vld [vmem:[%s491_s1 + $0x8] sm:$0xff] (!%p114_p2)  ;;  %vm229_vm3 = vcmask (!%p114_p2), 130048   ;;  %vm317_vm4 = vcmask (!%p114_p2), 60416  }
   0x6   : > { %117 = sbr.rel (%p114_p2) target bundleno = 597 (0x255), region = 28  ;;  %p136_p3 = scmp.lt.s32.totalorder (!%p114_p2), %s381_s11, 7  ;;  %v408_v15 = vpack.c.bf16 (!%p114_p2), %v222_v12, %v221_v11 }
   0x7   : > { %s441_s17 = smov (!%p114_p2), 16   ;;  %v162_v7 = vshrl.u32 (!%p114_p2), %v161_v6, 7 }
   0x8   : > { %409 = vmatprep.subr.bf16.mxu0 (!%p114_p2), %v408_v15 }
   0x9   : > { %vm163_vm0 = vcmp.lt.s32.totalorder (!%p114_p2), %v162_v7, 1  ;;  %411 = vmatpush3.bf16.msra.mxu0 (!%p114_p2), %v408_v15  ;;  %v166_v19 = vadd.s32 (!%p114_p2), 8, %v162_v7  ;;  %v171_v21 = vand.u32 (!%p114_p2), 7, %v162_v7 }
   0xb   : > { %v178_v22 = vand.u32 (!%p114_p2), 7, %v166_v19  ;;  %vm191_vm1 = vcmp.eq.s32.totalorder (!%p114_p2), %v171_v21, 0 }
   0xd   : > { %s494_s11 = smov (!%p136_p3, %s381_s11), 7  ;;  %vm192_vm2 = vcmp.eq.s32.totalorder %v178_v22, 0 }
   0xe   : > { %s382_s12 = sshll.u32 %s494_s11, 2 }
   0xf   : > { %s139_s15 = scalar_lea.vmem %s490_s0, %s382_s12  ;;  %s145_s24 = scalar_lea.vmem %s492_s2, %s382_s12 }
  0x10   : > { %v394_v0 = vld [vmem:[%s139_s15] sm:$0xff]  }
  0x11   : > { %v395_v1 = vunpack.c.l.bf16 %v394_v0  ;;  %v396_v2 = vunpack.c.h.bf16 %v394_v0 }
  0x13   : > { %v422_v3 = vpack.i.bf16 %v396_v2, %v395_v1  ;;  %v207_v4 = vmul.f32 2.0, %v395_v1  ;;  %v208_v5 = vmul.f32 2.0, %v396_v2 }
  0x15   : > { %423 = vrot.lane.b32.xlu0 %v422_v3, %s440_s16  ;;  %211 = vrot.lane.b32.xlu1 %v207_v4, %s441_s17 }
  0x19   : > { %213 = vrot.lane.b32.xlu1 %v208_v5, %s441_s17 }
  0x87   : > { %v424_v8 = vpop.permute.xlu0 %423  ;;  %v212_v20 = vpop.permute.xlu1 %211 }
  0x88   : > { %v426_v9 = vunpack.i.h.bf16 %v424_v8  ;;  %v425_v10 = vunpack.i.l.bf16 %v424_v8 }
  0x8a   : > { %v160_v13 = vrot.slane %v426_v9, 7  ;;  %v159_v14 = vrot.slane %v425_v10, 7 }
  0x8b   : > { %v214_v26 = vpop.permute.xlu1 %213 }
  0x8c   : > { %v164_v16 = vsel %vm163_vm0, %v159_v14, %v160_v13  ;;  %v165_v17 = vsel %vm163_vm0, %v160_v13, %v159_v14 }
  0x8d   : > { %v427_v18 = vpack.i.bf16 %v164_v16, %v165_v17 }
  0x8f   : > { %428 = vrot.lane.b32.xlu0 %v427_v18, %s441_s17 }
 0x101   : > { %v429_v23 = vpop.permute.xlu0 %428 }
 0x102   : > { %v431_v24 = vunpack.i.h.bf16 %v429_v23  ;;  %v430_v25 = vunpack.i.l.bf16 %v429_v23 }
 0x104   : > { %v205_v27 = vsel %vm191_vm1, %v395_v1, %v430_v25  ;;  %v206_v28 = vsel %vm192_vm2, %v396_v2, %v431_v24 }
 0x105   : > { %v218_v29 = vadd.f32 %v214_v26, %v206_v28  ;;  %v217_v30 = vadd.f32 %v212_v20, %v205_v27 }
 0x107   : > { %v220_v31 = vadd.f32 %v396_v2, %v218_v29  ;;  %v219_v32 = vadd.f32 %v395_v1, %v217_v30 }
 0x109   : > { %225 = vrot.lane.b32.xlu0 %v219_v32, %s440_s16  ;;  %227 = vrot.lane.b32.xlu1 %v220_v31, %s440_s16 }
 0x17b   : > { %v226_v33 = vpop.permute.xlu0 %225  ;;  %v228_v34 = vpop.permute.xlu1 %227 }
 0x17c   : > { %405 = vmatprep.mubr.msk.f32.mxu0 %vm229_vm3, %v226_v33 }
 0x17d   : > { %406 = vmatmul.mubr.msk.f32.vlgmr.msra.gmra.mrb[0].mxu0 %vm229_vm3, %v228_v34 }
 0x250   : > { %v407_v35 = vpop.f32.mrb[0].mxu0 }
 0x251   : > { %v300_v36 = vpop.f32.mrb[1].mxu0  ;;  %v392_v38 = vpack.c.bf16 %v407_v35, %v407_v35 }
 0x252   : > { %v391_v37 = vpack.c.bf16 %v300_v36, %v300_v36 }
 0x253   : > { %319 = vst.msk [vmem:[%s145_s24 + $0x4] sm:$0xf] %vm317_vm4, %v392_v38 }
 0x254   : > { %318 = vst.msk [vmem:[%s145_s24] sm:$0xf] %vm317_vm4, %v391_v37 }
 0x255 PF: > { %s12_s9 = sadd.s32 1, %s438_s9  }
 0x256   : > { %p9_p4 = scmp.ge.s32.totalorder %s12_s9, 6  }
 0x258   :  { %11 = sbr.rel (!%p9_p4) target bundleno = 1 (0x1), region = 58 }

</bundles_post_ra>
